<compile_context>
chip_gen: v7x
topology: tpu7x:2x2x1
jax: 0.10.0
libtpu: 0.0.40
codegen_flags: <defaults>
</compile_context>

<pallas_src>
import jax
import jax.numpy as jnp
from jax.experimental import pallas as pl
from jax.experimental.pallas import tpu as pltpu

_LANES = 128                      # vreg lane width
_MAX_COLS = 8192                  # widest lane-dense last dim we present
_TARGET_BLOCK_BYTES = 2 << 20     # ~2 MiB per ref per block
_SPLIT_FOR_TWO_CORES_BYTES = 4 << 20  # above this, force >=2 grid steps (v7x 2 TCs)


def _copy_kernel(a_ref, b_ref, a_out_ref, b_out_ref):
    # Pure element passthrough of the flattened views (identity copy).
    a_out_ref[...] = a_ref[...]
    b_out_ref[...] = b_ref[...]


def _round_up(x, m):
    return ((x + m - 1) // m) * m


def _sublane_multiple(dtype):
    # 8 rows/vreg for 32-bit, 16 for 16-bit, 32 for 8-bit packed dtypes.
    itemsize = jnp.dtype(dtype).itemsize
    return max(8, 32 // max(itemsize, 1))


def _lane_dense_shape(padded_total):
    """Largest 128 * 2^k (capped at _MAX_COLS) dividing padded_total."""
    cols = _LANES
    while cols * 2 <= _MAX_COLS and padded_total % (cols * 2) == 0:
        cols *= 2
    return padded_total // cols, cols


def _pallas_identity_copy(a_flat, b_flat):
    """Materialized identity copy of two equal-length flat arrays via Pallas."""
    total = int(a_flat.size)
    sub = max(_sublane_multiple(a_flat.dtype), _sublane_multiple(b_flat.dtype))
    itemsize = max(jnp.dtype(a_flat.dtype).itemsize, jnp.dtype(b_flat.dtype).itemsize)

    # Pad up to a full lane multiple so every store is an unmasked 128-lane vst.
    padded_total = _round_up(total, _LANES)
    pad = padded_total - total
    if pad:
        a_flat = jnp.pad(a_flat, (0, pad))
        b_flat = jnp.pad(b_flat, (0, pad))

    rows, cols = _lane_dense_shape(padded_total)
    a2 = a_flat.reshape(rows, cols)
    b2 = b_flat.reshape(rows, cols)

    # Row tile: ~2 MiB per ref per block, rounded to the sublane multiple.
    tm_cap = max(sub, (_TARGET_BLOCK_BYTES // (cols * itemsize)) // sub * sub)
    if rows <= tm_cap:
        if rows >= 2 * sub and rows * cols * itemsize >= _SPLIT_FOR_TWO_CORES_BYTES:
            # Give both v7x TensorCores work instead of a single grid step.
            tm = min(rows, _round_up((rows + 1) // 2, sub))
        else:
            tm = rows            # single full-extent block (always layout-legal)
    else:
        tm = tm_cap

    grid = (pl.cdiv(rows, tm),)
    spec = pl.BlockSpec((tm, cols), lambda i: (i, 0))

    a_out2, b_out2 = pl.pallas_call(
        _copy_kernel,
        out_shape=(
            jax.ShapeDtypeStruct((rows, cols), a2.dtype),
            jax.ShapeDtypeStruct((rows, cols), b2.dtype),
        ),
        grid=grid,
        in_specs=[spec, spec],
        out_specs=(spec, spec),
        compiler_params=pltpu.CompilerParams(
            dimension_semantics=("parallel",),
            # Headroom above v5e's 16 MiB default scoped VMEM; safe on v6e/v7x.
            vmem_limit_bytes=32 << 20,
        ),
    )(a2, b2)

    a_out = a_out2.reshape(-1)[:total]
    b_out = b_out2.reshape(-1)[:total]
    return a_out, b_out


def linear_base_forward(a, b, mask, input_size, *, materialize=False):
    """Replicates LinearBase.forward(a, b, mask) -> (shape, a_, b_).

    Default path is metadata-only (reshape views), exactly matching the
    reference semantics with zero data movement.  With materialize=True the
    flattened arrays are additionally pushed through a Pallas identity-copy
    kernel (fresh buffers).
    """
    shape = a.shape                      # torch: shape = a.size()
    N = int(input_size)
    assert a.size % N == 0, (
        f"a.numel()={a.size} is not divisible by input_size={N}")
    assert b.size == a.size, (
        f"b.numel()={b.size} must equal a.numel()={a.size} to view as (M, N)")
    M = a.size // N                      # torch: M = a.numel() // N (typo-fixed)
    del mask                             # unused in the reference forward

    if not materialize:
        # Metadata-only: no Pallas, no HBM traffic (the dominant optimization).
        return shape, a.reshape(M, N), b.reshape(M, N)

    a_out, b_out = _pallas_identity_copy(a.reshape(-1), b.reshape(-1))
    return shape, a_out.reshape(M, N), b_out.reshape(M, N)


def make_linear_base_params(input_size, output_size, seed=0):
    """Deterministic init of the (unused-in-forward) nn.Linear parameters."""
    key_w, key_b = jax.random.split(jax.random.PRNGKey(seed))
    bound = 1.0 / (input_size ** 0.5)
    weight = jax.random.uniform(
        key_w, (output_size, input_size), jnp.float32, -bound, bound)
    bias = jax.random.uniform(
        key_b, (output_size,), jnp.float32, -bound, bound)
    # TODO(synk): self.lin / self.do are never applied in LinearBase.forward,
    # so no matmul or dropout exists in this kernel by design.
    return {"weight": weight, "bias": bias}


if __name__ == "__main__":
    input_size = 32
    output_size = 32
    batch, seq = 2, 8                     # a, b: (batch, seq, input_size)

    params = make_linear_base_params(input_size, output_size, seed=0)

    key = jax.random.PRNGKey(0)
    ka, kb, km = jax.random.split(key, 3)
    a = jax.random.normal(ka, (batch, seq, input_size), dtype=jnp.float32)
    b = jax.random.normal(kb, (batch, seq, input_size), dtype=jnp.float32)
    mask = (jax.random.uniform(km, (batch, seq)) > 0.2).astype(jnp.float32)

    M = batch * seq
    ref_a = a.reshape(M, input_size)
    ref_b = b.reshape(M, input_size)

    # Default (fast) path: metadata-only, exactly like the PyTorch reference.
    shape, a_fast, b_fast = linear_base_forward(a, b, mask, input_size)

    # Pallas path: materialized identity copy through the kernel.
    shape_p, a_pal, b_pal = linear_base_forward(
        a, b, mask, input_size, materialize=True)
    jax.block_until_ready(a_pal)
    jax.block_until_ready(b_pal)

    assert shape == (batch, seq, input_size) and shape_p == shape
    assert a_fast.shape == (M, input_size) and b_fast.shape == (M, input_size)
    assert a_pal.shape == (M, input_size) and b_pal.shape == (M, input_size)
    assert jnp.array_equal(a_fast, ref_a) and jnp.array_equal(b_fast, ref_b)
    assert jnp.array_equal(a_pal, ref_a) and jnp.array_equal(b_pal, ref_b)

    print("KERNEL_OK")
</pallas_src>

<mosaic_0001>
module attributes {stable_mosaic.version = 11 : i64} {
  func.func @_copy_kernel(%arg0: i32, %arg1: memref<1x512xf32, #tpu.memory_space<vmem>>, %arg2: memref<1x512xf32, #tpu.memory_space<vmem>>, %arg3: memref<1x512xf32, #tpu.memory_space<vmem>>, %arg4: memref<1x512xf32, #tpu.memory_space<vmem>>) attributes {dimension_semantics = [#tpu.dimension_semantics<parallel>], iteration_bounds = array<i64: 1>, scalar_prefetch = 0 : i64, scratch_operands = 0 : i64, tpu.core_type = #tpu.core_type<tc>, window_params = [{transform_indices = @transform_0, window_bounds = array<i64: 1, 512>}, {transform_indices = @transform_1, window_bounds = array<i64: 1, 512>}, {transform_indices = @transform_2, window_bounds = array<i64: 1, 512>}, {transform_indices = @transform_3, window_bounds = array<i64: 1, 512>}]} {
    %c0 = arith.constant 0 : index
    %c0_0 = arith.constant 0 : index
    %0 = vector.load %arg1[%c0, %c0_0] : memref<1x512xf32, #tpu.memory_space<vmem>>, vector<1x512xf32>
    %c0_1 = arith.constant 0 : index
    %c0_2 = arith.constant 0 : index
    %1 = vector.load %arg3[%c0_1, %c0_2] : memref<1x512xf32, #tpu.memory_space<vmem>>, vector<1x512xf32>
    tpu.vector_store %arg3[%c0_1, %c0_2], %0 {strides = array<i32>} : memref<1x512xf32, #tpu.memory_space<vmem>>, vector<1x512xf32>,
    %c0_3 = arith.constant 0 : index
    %c0_4 = arith.constant 0 : index
    %2 = vector.load %arg2[%c0_3, %c0_4] : memref<1x512xf32, #tpu.memory_space<vmem>>, vector<1x512xf32>
    %c0_5 = arith.constant 0 : index
    %c0_6 = arith.constant 0 : index
    %3 = vector.load %arg4[%c0_5, %c0_6] : memref<1x512xf32, #tpu.memory_space<vmem>>, vector<1x512xf32>
    tpu.vector_store %arg4[%c0_5, %c0_6], %2 {strides = array<i32>} : memref<1x512xf32, #tpu.memory_space<vmem>>, vector<1x512xf32>,
    return
  }
  func.func @transform_0(%arg0: i32) -> (i32, i32) {
    %c0_i32 = arith.constant 0 : i32
    %c0_i32_0 = arith.constant 0 : i32
    return %arg0, %c0_i32 : i32, i32
  }
  func.func @transform_1(%arg0: i32) -> (i32, i32) {
    %c0_i32 = arith.constant 0 : i32
    %c0_i32_0 = arith.constant 0 : i32
    return %arg0, %c0_i32 : i32, i32
  }
  func.func @transform_2(%arg0: i32) -> (i32, i32) {
    %c0_i32 = arith.constant 0 : i32
    %c0_i32_0 = arith.constant 0 : i32
    return %arg0, %c0_i32 : i32, i32
  }
  func.func @transform_3(%arg0: i32) -> (i32, i32) {
    %c0_i32 = arith.constant 0 : i32
    %c0_i32_0 = arith.constant 0 : i32
    return %arg0, %c0_i32 : i32, i32
  }
}

</mosaic_0001>

<bundles_post_ra>
// kernel: tpu_custom_call.1
= control target key start
LH: loop header
LB: loop body
LE: loop exit
PB: predicated region body
PF: predicated region fallthrough
CT: control target
= control target key end

     0   :  { %9 = vsyncpa [#allocation3], 0  ;;  %s249_s0 = inlined_call_operand.hbm [shape: f32[1,512], index: 0, kind: input, shape index: {}]   ;;  %s250_s1 = inlined_call_operand.hbm [shape: f32[1,512], index: 1, kind: input, shape index: {}]   ;;  %s251_s2 = inlined_call_operand.hbm [shape: f32[1,512], index: 2, kind: output, shape index: {0}]   ;;  %s252_s3 = inlined_call_operand.hbm [shape: f32[1,512], index: 3, kind: output, shape index: {1}]  }
   0x1   :  { %10 = vsyncpa [#allocation6], 0 }
   0x2   :  { %11 = vsyncpa [#allocation4], 0 }
   0x3   :  { %12 = vsyncpa [#allocation9], 0  ;;  %s177_s12 = smov [#allocation2]   ;;  %s178_s14 = smov [#allocation5]  }
   0x4   :  { %s19_s13 = sshll.u32 %s177_s12, 4  ;;  %s29_s15 = sshll.u32 %s178_s14, 4  ;;  %s20_s13 = int_to_ptr.vmem [resolvable:$true] %s19_s13  ;;  %s30_s15 = int_to_ptr.vmem [resolvable:$true] %s29_s15 }
   0x5   :  { %s81_s18 = scalar_lea.hbm %s249_s0, 64 }
   0x6   :  { %p82_p0 = scmp.ne.s32.totalorder %s249_s0, %s81_s18  ;;  %p85_p1 = scmp.lt.u32.totalorder %s81_s18, %s249_s0 }
   0x8   :  { %p87_p2 = pnand %p85_p1, %p82_p0 }
   0xa   :  { %90 = shalt.err (!%p87_p2)
}
   0xb   :  { %s91_s23 = scalar_lea.vmem %s20_s13, 64  ;;  %p96_p4 = scmp.lt.s32.totalorder %s20_s13, %s20_s13 }
   0xc   :  { %p92_p3 = scmp.ne.s32.totalorder %s20_s13, %s91_s23  ;;  %p97_p5 = scmp.lt.s32.totalorder %s91_s23, %s91_s23 }
   0xe   :  { %p98_p6 = por %p97_p5, %p96_p4 }
  0x10   :  { %p99_p7 = pnand %p98_p6, %p92_p3 }
  0x12   :  { %102 = shalt.err (!%p99_p7)
}
  0x13   :  { %22 = dma.hbm_to_vmem [thread:$0]  %s249_s0, 64, %s20_s13, [#allocation3]  }
  0x14   :  { %s103_s28 = scalar_lea.hbm %s250_s1, 64 }
  0x15   :  { %p104_p8 = scmp.ne.s32.totalorder %s250_s1, %s103_s28  ;;  %p107_p9 = scmp.lt.u32.totalorder %s103_s28, %s250_s1 }
  0x17   :  { %p109_p10 = pnand %p107_p9, %p104_p8 }
  0x19   :  { %112 = shalt.err (!%p109_p10)
}
  0x1a   :  { %s113_s6 = scalar_lea.vmem %s30_s15, 64  ;;  %p118_p12 = scmp.lt.s32.totalorder %s30_s15, %s30_s15 }
  0x1b   :  { %p114_p11 = scmp.ne.s32.totalorder %s30_s15, %s113_s6  ;;  %p119_p13 = scmp.lt.s32.totalorder %s113_s6, %s113_s6 }
  0x1d   :  { %p120_p0 = por %p119_p13, %p118_p12 }
  0x1f   :  { %p121_p1 = pnand %p120_p0, %p114_p11 }
  0x21   :  { %124 = shalt.err (!%p121_p1)
}
  0x22   :  { %32 = dma.hbm_to_vmem [thread:$0]  %s250_s1, 64, %s30_s15, [#allocation6]  }
  0x23   :  { %169 = dma.done.wait [#allocation3], 64  }
  0x24   :  { %170 = vsyncadd [#allocation3], 4294967232 }
  0x25   :  { %171 = dma.done.wait [#allocation6], 64  }
  0x26   :  { %172 = vsyncadd [#allocation6], 4294967232  ;;  %v40_v0 = vlaneseq  ;;  %s179_s8 = smov [#allocation7]   ;;  %s180_s10 = smov [#allocation8]   ;;  %v39_v1 = vld [vmem:[#allocation2] sm:$0xf] }
  0x27   :  { %s53_s9 = sshll.u32 %s179_s8, 4  ;;  %s63_s11 = sshll.u32 %s180_s10, 4  ;;  %v45_v2 = vld [vmem:[#allocation5] sm:$0xf]  ;;  %s54_s9 = int_to_ptr.vmem [resolvable:$true] %s53_s9  ;;  %s64_s11 = int_to_ptr.vmem [resolvable:$true] %s63_s11 }
  0x28   :  { %vm42_vm0 = vcmp.lt.s32.totalorder %v40_v0, 512  ;;  %s125_s12 = scalar_lea.vmem %s54_s9, 64  ;;  %p130_p3 = scmp.lt.s32.totalorder %s54_s9, %s54_s9 }
  0x29   :  { %44 = vst.msk [vmem:[#allocation7] sm:$0xf] %vm42_vm0, %v39_v1  ;;  %46 = vst.msk [vmem:[#allocation8] sm:$0xf] %vm42_vm0, %v45_v2  ;;  %p126_p2 = scmp.ne.s32.totalorder %s54_s9, %s125_s12  ;;  %p131_p4 = scmp.lt.s32.totalorder %s125_s12, %s125_s12 }
  0x2b   :  { %p132_p5 = por %p131_p4, %p130_p3 }
  0x2d   :  { %p133_p6 = pnand %p132_p5, %p126_p2 }
  0x2f   :  { %136 = shalt.err (!%p133_p6)
}
  0x30   :  { %s137_s14 = scalar_lea.hbm %s251_s2, 64 }
  0x31   :  { %p138_p7 = scmp.ne.s32.totalorder %s251_s2, %s137_s14  ;;  %p141_p8 = scmp.lt.u32.totalorder %s137_s14, %s251_s2 }
  0x33   :  { %p143_p9 = pnand %p141_p8, %p138_p7 }
  0x35   :  { %146 = shalt.err (!%p143_p9)
}
  0x36   :  { %56 = dma.vmem_to_hbm [thread:$0]  %s54_s9, 64, %s251_s2, [#allocation4]  }
  0x37   :  { %s147_s21 = scalar_lea.vmem %s64_s11, 64  ;;  %p152_p11 = scmp.lt.s32.totalorder %s64_s11, %s64_s11 }
  0x38   :  { %p148_p10 = scmp.ne.s32.totalorder %s64_s11, %s147_s21  ;;  %p153_p12 = scmp.lt.s32.totalorder %s147_s21, %s147_s21 }
  0x3a   :  { %p154_p13 = por %p153_p12, %p152_p11 }
  0x3c   :  { %p155_p0 = pnand %p154_p13, %p148_p10 }
  0x3e   :  { %158 = shalt.err (!%p155_p0)
}
  0x3f   :  { %s159_s24 = scalar_lea.hbm %s252_s3, 64 }
  0x40   :  { %p160_p1 = scmp.ne.s32.totalorder %s252_s3, %s159_s24  ;;  %p163_p2 = scmp.lt.u32.totalorder %s159_s24, %s252_s3 }
  0x42   :  { %p165_p3 = pnand %p163_p2, %p160_p1 }
  0x44   :  { %168 = shalt.err (!%p165_p3)
}
  0x45   :  { %66 = dma.vmem_to_hbm [thread:$0]  %s64_s11, 64, %s252_s3, [#allocation9]  }
  0x46   :  { %173 = dma.done.wait [#allocation4], 64  }
  0x47   :  { %174 = vsyncadd [#allocation4], 4294967232 }
  0x48   :  { %175 = dma.done.wait [#allocation9], 64  }
  0x49   :  { %176 = vsyncadd [#allocation9], 4294967232 }
  0x4a   :  { %73 = vsyncpa [#allocation3], 1 }
  0x4b   :  { %74 = vsyncpa [#allocation6], 1 }
  0x4c   :  { %75 = vsyncpa [#allocation4], 1 }
  0x4d   :  { %76 = vsyncpa [#allocation9], 1 }

</bundles_post_ra>
